<compile_context>
chip_gen: v6e
topology: v6e:2x2x1
jax: 0.10.0
libtpu: 0.0.40
codegen_flags: <defaults>
</compile_context>

<pallas_src>
import functools

import jax
import jax.numpy as jnp
import numpy as np
from jax.experimental import pallas as pl
from jax.experimental.pallas import tpu as pltpu

# ---------------------------------------------------------------------------
# configuration (stands in for readcfg('cfg/yolond'))
# ---------------------------------------------------------------------------
CLASS_NUM = 20          # standard VOC class count
SIDE = 8                # S  (grid side)
NUM = 2                 # B  (boxes per cell)
COORD_SCALE = 5.0
NOOBJ_SCALE = 0.5
BATCH = 2


# ---------------------------------------------------------------------------
# Pallas kernel  (channels on the leading axis, cells on (sublane, lane))
# ---------------------------------------------------------------------------
def _yolo_loss_kernel(p_ref, l_ref, out_ref, *,
                      side, num, coord_scale, noobj_scale, bbox_size,
                      class_num):
    # p_ref / l_ref : (cell_size, TM_SUB, 128) VMEM blocks
    # out_ref       : (TM_SUB, 128) per-cell loss block
    s = jnp.float32(1.0 / side)

    conf0 = l_ref[4]                       # (TM_SUB, 128) label box-0 confidence
    obj = conf0 > 0.0
    noobj = conf0 == 0.0
    zero = jnp.zeros_like(conf0)

    # ---- label box 0 corners (same coord transform as the reference code)
    lx, ly, lw, lh = l_ref[0], l_ref[1], l_ref[2], l_ref[3]
    l_x1 = lx * s - 0.5 * lw
    l_y1 = ly * s - 0.5 * lh
    l_x2 = lx * s + 0.5 * lw
    l_y2 = ly * s + 0.5 * lh
    l_area = (l_x2 - l_x1) * (l_y2 - l_y1)

    # ---- single fused pass per box: IoU + per-box loss terms.
    # Only xy_i / wh_i / pc_i / iou_i stay live across boxes (small live set).
    noobj_term = zero
    xy_terms, wh_terms, pcs, ious = [], [], [], []
    for i in range(num):
        o = i * 5
        px, py, pw, ph, pc = (p_ref[o], p_ref[o + 1], p_ref[o + 2],
                              p_ref[o + 3], p_ref[o + 4])
        lxi, lyi, lwi, lhi, lc = (l_ref[o], l_ref[o + 1], l_ref[o + 2],
                                  l_ref[o + 3], l_ref[o + 4])

        p_x1 = px * s - 0.5 * pw
        p_y1 = py * s - 0.5 * ph
        p_x2 = px * s + 0.5 * pw
        p_y2 = py * s + 0.5 * ph
        ix1 = jnp.maximum(p_x1, l_x1)
        iy1 = jnp.maximum(p_y1, l_y1)
        ix2 = jnp.minimum(p_x2, l_x2)
        iy2 = jnp.minimum(p_y2, l_y2)
        inter = jnp.maximum(ix2 - ix1, 0.0) * jnp.maximum(iy2 - iy1, 0.0)
        p_area = (p_x2 - p_x1) * (p_y2 - p_y1)
        denom = p_area + l_area - inter
        # guard degenerate zero-area boxes (reference would produce NaN there);
        # these cells are masked out of the obj branch anyway.
        denom = jnp.where(denom == 0.0, jnp.float32(1.0), denom)
        iou = inter / denom

        noobj_term = noobj_term + (pc - lc) ** 2
        xy_i = (px - lxi) ** 2 + (py - lyi) ** 2
        # (sqrt(a) - sqrt(b))^2 == a + b - 2*sqrt(a*b)  -> half the EUP sqrts
        wh_i = (pw + lwi - 2.0 * jnp.sqrt(jnp.maximum(pw * lwi, 0.0)) +
                ph + lhi - 2.0 * jnp.sqrt(jnp.maximum(ph * lhi, 0.0)))

        xy_terms.append(xy_i)
        wh_terms.append(wh_i)
        pcs.append(pc)
        ious.append(iou)

    # ---- responsible box = first argmax over IoU (torch .max(0) tie rule)
    best = ious[0]
    resp = [jnp.ones_like(obj)]
    for i in range(1, num):
        better = ious[i] > best
        resp = [jnp.logical_and(r, jnp.logical_not(better)) for r in resp]
        resp.append(better)
        best = jnp.where(better, ious[i], best)

    xy_term = zero
    wh_term = zero
    resp_term = zero
    not_resp_term = zero
    for i in range(num):
        is_resp = resp[i]
        xy_term = xy_term + jnp.where(is_resp, xy_terms[i], zero)
        wh_term = wh_term + jnp.where(is_resp, wh_terms[i], zero)
        resp_term = resp_term + jnp.where(is_resp, (pcs[i] - best) ** 2, zero)
        not_resp_term = not_resp_term + jnp.where(is_resp, zero, pcs[i] ** 2)

    # ---- class loss (obj cells only); accumulate channel-by-channel so the
    # live set stays at one accumulator + two loaded tiles.
    class_term = zero
    for k in range(class_num):
        d = p_ref[bbox_size + k] - l_ref[bbox_size + k]
        class_term = class_term + d * d

    obj_loss = (coord_scale * (xy_term + wh_term)
                + 2.0 * resp_term
                + not_resp_term
                + class_term)

    # per-cell loss, lane-dense (TM_SUB, 128) unmasked store
    out_ref[...] = (jnp.where(obj, obj_loss, zero)
                    + jnp.where(noobj, noobj_scale * noobj_term, zero))


# ---------------------------------------------------------------------------
# wrapper
# ---------------------------------------------------------------------------
def yolo_loss_pallas(preds, labels, *, side=SIDE, num=NUM,
                     coord_scale=COORD_SCALE, noobj_scale=NOOBJ_SCALE,
                     sublane_tile=8):
    """preds/labels: (batch, S, S, num*5 + class_num), float32."""
    n, s1, s2, c = preds.shape
    assert s1 == side and s2 == side and c == num * 5 + CLASS_NUM
    assert sublane_tile % 8 == 0
    rows = n * s1 * s2

    cells_per_step = sublane_tile * 128
    padded = ((rows + cells_per_step - 1) // cells_per_step) * cells_per_step
    nblk = padded // 128
    tiles = padded // cells_per_step

    # channels-major layout: (c, padded/128, 128).  Under jit this is a single
    # fused pad+transpose pass over each input.
    # TODO(synk): have the producer emit channels-major directly to drop this
    # extra HBM pass once the kernel is memory-bound at large batch sizes.
    def to_blocked(x):
        x = x.astype(jnp.float32).reshape(rows, c)
        if padded != rows:
            x = jnp.pad(x, ((0, padded - rows), (0, 0)))
        return x.reshape(nblk, 128, c).transpose(2, 0, 1)      # (c, nblk, 128)

    p3 = to_blocked(preds)
    l3 = to_blocked(labels)

    kernel = functools.partial(
        _yolo_loss_kernel,
        side=side, num=num, coord_scale=coord_scale,
        noobj_scale=noobj_scale, bbox_size=num * 5, class_num=CLASS_NUM)

    per_cell = pl.pallas_call(
        kernel,
        out_shape=jax.ShapeDtypeStruct((nblk, 128), jnp.float32),
        grid_spec=pltpu.PrefetchScalarGridSpec(
            num_scalar_prefetch=0,
            grid=(tiles,),
            in_specs=[pl.BlockSpec((c, sublane_tile, 128), lambda i: (0, i, 0)),
                      pl.BlockSpec((c, sublane_tile, 128), lambda i: (0, i, 0))],
            out_specs=pl.BlockSpec((sublane_tile, 128), lambda i: (i, 0))),
        compiler_params=pltpu.CompilerParams(
            dimension_semantics=("parallel",)),   # lets v7x use both TCs
    )(p3, l3)

    # tiny reduction over the per-cell partials (1 f32 per cell)
    return jnp.sum(per_cell) / jnp.float32(n)


# ---------------------------------------------------------------------------
# literal numpy port of the PyTorch loss (for verification only)
# ---------------------------------------------------------------------------
def yolo_loss_reference(preds, labels, *, side=SIDE, num=NUM,
                        coord_scale=COORD_SCALE, noobj_scale=NOOBJ_SCALE):
    preds = np.asarray(preds, dtype=np.float32)
    labels = np.asarray(labels, dtype=np.float32)
    n = preds.shape[0]
    bbox_size = num * 5
    cell_size = bbox_size + CLASS_NUM
    P = preds.reshape(-1, cell_size)
    L = labels.reshape(-1, cell_size)
    obj = L[:, 4] > 0
    noobj = L[:, 4] == 0

    obj_pred, obj_label = P[obj], L[obj]
    box_pred = obj_pred[:, :bbox_size].reshape(-1, 5)
    box_label = obj_label[:, :bbox_size].reshape(-1, 5)
    class_pred = obj_pred[:, bbox_size:]
    class_label = obj_label[:, bbox_size:]

    noobj_pred, noobj_label = P[noobj], L[noobj]
    c_cols = [i * 5 + 4 for i in range(num)]
    noobj_loss = np.sum((noobj_pred[:, c_cols] - noobj_label[:, c_cols]) ** 2)

    s = 1.0 / side
    resp = np.zeros(box_pred.shape[0], dtype=bool)
    not_resp = np.zeros(box_pred.shape[0], dtype=bool)
    box_label_iou = np.zeros_like(box_label)
    for i in range(0, box_label.shape[0], num):
        b1 = box_pred[i:i + num]
        b1c = np.empty((num, 4), np.float32)
        b1c[:, :2] = b1[:, :2] * s - 0.5 * b1[:, 2:4]
        b1c[:, 2:4] = b1[:, :2] * s + 0.5 * b1[:, 2:4]
        b2 = box_label[i:i + 1]
        b2c = np.empty((1, 4), np.float32)
        b2c[:, :2] = b2[:, :2] * s - 0.5 * b2[:, 2:4]
        b2c[:, 2:4] = b2[:, :2] * s + 0.5 * b2[:, 2:4]
        ix1 = np.maximum(b1c[:, 0], b2c[:, 0])
        iy1 = np.maximum(b1c[:, 1], b2c[:, 1])
        ix2 = np.minimum(b1c[:, 2], b2c[:, 2])
        iy2 = np.minimum(b1c[:, 3], b2c[:, 3])
        inter = np.clip(ix2 - ix1, 0, None) * np.clip(iy2 - iy1, 0, None)
        a1 = (b1c[:, 2] - b1c[:, 0]) * (b1c[:, 3] - b1c[:, 1])
        a2 = (b2c[:, 2] - b2c[:, 0]) * (b2c[:, 3] - b2c[:, 1])
        iou = inter / (a1 + a2 - inter)
        mi = int(np.argmax(iou))
        resp[i + mi] = True
        not_resp[i:i + num] = True
        not_resp[i + mi] = False
        box_label_iou[i + mi, 4] = iou[mi]

    bpr, blr, blri = box_pred[resp], box_label[resp], box_label_iou[resp]
    response_loss = np.sum((bpr[:, 4] - blri[:, 4]) ** 2)
    xy_loss = np.sum((bpr[:, :2] - blr[:, :2]) ** 2)
    wh_loss = np.sum((np.sqrt(bpr[:, 2:4]) - np.sqrt(blr[:, 2:4])) ** 2)
    not_response_loss = np.sum(box_pred[not_resp][:, 4] ** 2)
    class_loss = np.sum((class_pred - class_label) ** 2)

    total = (coord_scale * (xy_loss + wh_loss) + 2.0 * response_loss
             + not_response_loss + 1.0 * noobj_scale * noobj_loss + class_loss)
    return np.float32(total / n)


# ---------------------------------------------------------------------------
# main
# ---------------------------------------------------------------------------
if __name__ == "__main__":
    cell_size = NUM * 5 + CLASS_NUM
    key = jax.random.PRNGKey(0)
    kp, kl, kc = jax.random.split(key, 3)

    # preds/labels kept strictly positive so sqrt(w), sqrt(h) and IoU areas are
    # well-defined, exactly as the reference loss assumes.
    preds = jax.random.uniform(kp, (BATCH, SIDE, SIDE, cell_size),
                               minval=0.05, maxval=0.95, dtype=jnp.float32)
    labels = jax.random.uniform(kl, (BATCH, SIDE, SIDE, cell_size),
                                minval=0.05, maxval=0.95, dtype=jnp.float32)

    # deterministic object pattern: ~40% of cells contain an object
    obj_cells = jax.random.uniform(kc, (BATCH, SIDE, SIDE)) < 0.4
    for i in range(NUM):
        labels = labels.at[..., i * 5 + 4].set(jnp.where(obj_cells, 1.0, 0.0))

    loss = jax.jit(yolo_loss_pallas)(preds, labels)
    loss = jax.block_until_ready(loss)

    ref = yolo_loss_reference(np.array(preds), np.array(labels))
    np.testing.assert_allclose(np.float32(loss), ref, rtol=2e-4, atol=2e-4)

    print("KERNEL_OK")
</pallas_src>

<mosaic_0001>
module attributes {stable_mosaic.version = 11 : i64} {
  func.func @_yolo_loss_kernel(%arg0: i32, %arg1: memref<30x8x128xf32, #tpu.memory_space<vmem>>, %arg2: memref<30x8x128xf32, #tpu.memory_space<vmem>>, %arg3: memref<8x128xf32, #tpu.memory_space<vmem>>) attributes {dimension_semantics = [#tpu.dimension_semantics<parallel>], iteration_bounds = array<i64: 1>, scalar_prefetch = 0 : i64, scratch_operands = 0 : i64, tpu.core_type = #tpu.core_type<tc>, window_params = [{transform_indices = @transform_0, window_bounds = array<i64: 30, 8, 128>}, {transform_indices = @transform_1, window_bounds = array<i64: 30, 8, 128>}, {transform_indices = @transform_2, window_bounds = array<i64: 8, 128>}]} {
    %c4 = arith.constant 4 : index
    %c0 = arith.constant 0 : index
    %c0_0 = arith.constant 0 : index
    %0 = vector.load %arg2[%c4, %c0, %c0_0] : memref<30x8x128xf32, #tpu.memory_space<vmem>>, vector<1x8x128xf32>
    %1 = vector.shape_cast %0 : vector<1x8x128xf32> to vector<8x128xf32>
    %cst = arith.constant 0.000000e+00 : f32
    %2 = vector.broadcast %cst : f32 to vector<8x128xf32>
    %3 = arith.cmpf ogt, %1, %2 : vector<8x128xf32>
    %cst_1 = arith.constant 0.000000e+00 : f32
    %4 = vector.broadcast %cst_1 : f32 to vector<8x128xf32>
    %5 = arith.cmpf oeq, %1, %4 : vector<8x128xf32>
    %cst_2 = arith.constant 0.000000e+00 : f32
    %6 = vector.broadcast %cst_2 : f32 to vector<8x128xf32>
    %c0_3 = arith.constant 0 : index
    %c0_4 = arith.constant 0 : index
    %c0_5 = arith.constant 0 : index
    %7 = vector.load %arg2[%c0_3, %c0_4, %c0_5] : memref<30x8x128xf32, #tpu.memory_space<vmem>>, vector<1x8x128xf32>
    %8 = vector.shape_cast %7 : vector<1x8x128xf32> to vector<8x128xf32>
    %c1 = arith.constant 1 : index
    %c0_6 = arith.constant 0 : index
    %c0_7 = arith.constant 0 : index
    %9 = vector.load %arg2[%c1, %c0_6, %c0_7] : memref<30x8x128xf32, #tpu.memory_space<vmem>>, vector<1x8x128xf32>
    %10 = vector.shape_cast %9 : vector<1x8x128xf32> to vector<8x128xf32>
    %c2 = arith.constant 2 : index
    %c0_8 = arith.constant 0 : index
    %c0_9 = arith.constant 0 : index
    %11 = vector.load %arg2[%c2, %c0_8, %c0_9] : memref<30x8x128xf32, #tpu.memory_space<vmem>>, vector<1x8x128xf32>
    %12 = vector.shape_cast %11 : vector<1x8x128xf32> to vector<8x128xf32>
    %c3 = arith.constant 3 : index
    %c0_10 = arith.constant 0 : index
    %c0_11 = arith.constant 0 : index
    %13 = vector.load %arg2[%c3, %c0_10, %c0_11] : memref<30x8x128xf32, #tpu.memory_space<vmem>>, vector<1x8x128xf32>
    %14 = vector.shape_cast %13 : vector<1x8x128xf32> to vector<8x128xf32>
    %cst_12 = arith.constant 1.250000e-01 : f32
    %15 = vector.broadcast %cst_12 : f32 to vector<8x128xf32>
    %16 = arith.mulf %8, %15 : vector<8x128xf32>
    %cst_13 = arith.constant 5.000000e-01 : f32
    %17 = vector.broadcast %cst_13 : f32 to vector<8x128xf32>
    %18 = arith.mulf %17, %12 : vector<8x128xf32>
    %19 = arith.subf %16, %18 : vector<8x128xf32>
    %cst_14 = arith.constant 1.250000e-01 : f32
    %20 = vector.broadcast %cst_14 : f32 to vector<8x128xf32>
    %21 = arith.mulf %10, %20 : vector<8x128xf32>
    %cst_15 = arith.constant 5.000000e-01 : f32
    %22 = vector.broadcast %cst_15 : f32 to vector<8x128xf32>
    %23 = arith.mulf %22, %14 : vector<8x128xf32>
    %24 = arith.subf %21, %23 : vector<8x128xf32>
    %cst_16 = arith.constant 1.250000e-01 : f32
    %25 = vector.broadcast %cst_16 : f32 to vector<8x128xf32>
    %26 = arith.mulf %8, %25 : vector<8x128xf32>
    %cst_17 = arith.constant 5.000000e-01 : f32
    %27 = vector.broadcast %cst_17 : f32 to vector<8x128xf32>
    %28 = arith.mulf %27, %12 : vector<8x128xf32>
    %29 = arith.addf %26, %28 : vector<8x128xf32>
    %cst_18 = arith.constant 1.250000e-01 : f32
    %30 = vector.broadcast %cst_18 : f32 to vector<8x128xf32>
    %31 = arith.mulf %10, %30 : vector<8x128xf32>
    %cst_19 = arith.constant 5.000000e-01 : f32
    %32 = vector.broadcast %cst_19 : f32 to vector<8x128xf32>
    %33 = arith.mulf %32, %14 : vector<8x128xf32>
    %34 = arith.addf %31, %33 : vector<8x128xf32>
    %35 = arith.subf %29, %19 : vector<8x128xf32>
    %36 = arith.subf %34, %24 : vector<8x128xf32>
    %37 = arith.mulf %35, %36 : vector<8x128xf32>
    %c0_20 = arith.constant 0 : index
    %c0_21 = arith.constant 0 : index
    %c0_22 = arith.constant 0 : index
    %38 = vector.load %arg1[%c0_20, %c0_21, %c0_22] : memref<30x8x128xf32, #tpu.memory_space<vmem>>, vector<1x8x128xf32>
    %39 = vector.shape_cast %38 : vector<1x8x128xf32> to vector<8x128xf32>
    %c1_23 = arith.constant 1 : index
    %c0_24 = arith.constant 0 : index
    %c0_25 = arith.constant 0 : index
    %40 = vector.load %arg1[%c1_23, %c0_24, %c0_25] : memref<30x8x128xf32, #tpu.memory_space<vmem>>, vector<1x8x128xf32>
    %41 = vector.shape_cast %40 : vector<1x8x128xf32> to vector<8x128xf32>
    %c2_26 = arith.constant 2 : index
    %c0_27 = arith.constant 0 : index
    %c0_28 = arith.constant 0 : index
    %42 = vector.load %arg1[%c2_26, %c0_27, %c0_28] : memref<30x8x128xf32, #tpu.memory_space<vmem>>, vector<1x8x128xf32>
    %43 = vector.shape_cast %42 : vector<1x8x128xf32> to vector<8x128xf32>
    %c3_29 = arith.constant 3 : index
    %c0_30 = arith.constant 0 : index
    %c0_31 = arith.constant 0 : index
    %44 = vector.load %arg1[%c3_29, %c0_30, %c0_31] : memref<30x8x128xf32, #tpu.memory_space<vmem>>, vector<1x8x128xf32>
    %45 = vector.shape_cast %44 : vector<1x8x128xf32> to vector<8x128xf32>
    %c4_32 = arith.constant 4 : index
    %c0_33 = arith.constant 0 : index
    %c0_34 = arith.constant 0 : index
    %46 = vector.load %arg1[%c4_32, %c0_33, %c0_34] : memref<30x8x128xf32, #tpu.memory_space<vmem>>, vector<1x8x128xf32>
    %47 = vector.shape_cast %46 : vector<1x8x128xf32> to vector<8x128xf32>
    %c0_35 = arith.constant 0 : index
    %c0_36 = arith.constant 0 : index
    %c0_37 = arith.constant 0 : index
    %48 = vector.load %arg2[%c0_35, %c0_36, %c0_37] : memref<30x8x128xf32, #tpu.memory_space<vmem>>, vector<1x8x128xf32>
    %49 = vector.shape_cast %48 : vector<1x8x128xf32> to vector<8x128xf32>
    %c1_38 = arith.constant 1 : index
    %c0_39 = arith.constant 0 : index
    %c0_40 = arith.constant 0 : index
    %50 = vector.load %arg2[%c1_38, %c0_39, %c0_40] : memref<30x8x128xf32, #tpu.memory_space<vmem>>, vector<1x8x128xf32>
    %51 = vector.shape_cast %50 : vector<1x8x128xf32> to vector<8x128xf32>
    %c2_41 = arith.constant 2 : index
    %c0_42 = arith.constant 0 : index
    %c0_43 = arith.constant 0 : index
    %52 = vector.load %arg2[%c2_41, %c0_42, %c0_43] : memref<30x8x128xf32, #tpu.memory_space<vmem>>, vector<1x8x128xf32>
    %53 = vector.shape_cast %52 : vector<1x8x128xf32> to vector<8x128xf32>
    %c3_44 = arith.constant 3 : index
    %c0_45 = arith.constant 0 : index
    %c0_46 = arith.constant 0 : index
    %54 = vector.load %arg2[%c3_44, %c0_45, %c0_46] : memref<30x8x128xf32, #tpu.memory_space<vmem>>, vector<1x8x128xf32>
    %55 = vector.shape_cast %54 : vector<1x8x128xf32> to vector<8x128xf32>
    %c4_47 = arith.constant 4 : index
    %c0_48 = arith.constant 0 : index
    %c0_49 = arith.constant 0 : index
    %56 = vector.load %arg2[%c4_47, %c0_48, %c0_49] : memref<30x8x128xf32, #tpu.memory_space<vmem>>, vector<1x8x128xf32>
    %57 = vector.shape_cast %56 : vector<1x8x128xf32> to vector<8x128xf32>
    %cst_50 = arith.constant 1.250000e-01 : f32
    %58 = vector.broadcast %cst_50 : f32 to vector<8x128xf32>
    %59 = arith.mulf %39, %58 : vector<8x128xf32>
    %cst_51 = arith.constant 5.000000e-01 : f32
    %60 = vector.broadcast %cst_51 : f32 to vector<8x128xf32>
    %61 = arith.mulf %60, %43 : vector<8x128xf32>
    %62 = arith.subf %59, %61 : vector<8x128xf32>
    %cst_52 = arith.constant 1.250000e-01 : f32
    %63 = vector.broadcast %cst_52 : f32 to vector<8x128xf32>
    %64 = arith.mulf %41, %63 : vector<8x128xf32>
    %cst_53 = arith.constant 5.000000e-01 : f32
    %65 = vector.broadcast %cst_53 : f32 to vector<8x128xf32>
    %66 = arith.mulf %65, %45 : vector<8x128xf32>
    %67 = arith.subf %64, %66 : vector<8x128xf32>
    %cst_54 = arith.constant 1.250000e-01 : f32
    %68 = vector.broadcast %cst_54 : f32 to vector<8x128xf32>
    %69 = arith.mulf %39, %68 : vector<8x128xf32>
    %cst_55 = arith.constant 5.000000e-01 : f32
    %70 = vector.broadcast %cst_55 : f32 to vector<8x128xf32>
    %71 = arith.mulf %70, %43 : vector<8x128xf32>
    %72 = arith.addf %69, %71 : vector<8x128xf32>
    %cst_56 = arith.constant 1.250000e-01 : f32
    %73 = vector.broadcast %cst_56 : f32 to vector<8x128xf32>
    %74 = arith.mulf %41, %73 : vector<8x128xf32>
    %cst_57 = arith.constant 5.000000e-01 : f32
    %75 = vector.broadcast %cst_57 : f32 to vector<8x128xf32>
    %76 = arith.mulf %75, %45 : vector<8x128xf32>
    %77 = arith.addf %74, %76 : vector<8x128xf32>
    %78 = arith.maximumf %62, %19 : vector<8x128xf32>
    %79 = arith.maximumf %67, %24 : vector<8x128xf32>
    %80 = arith.minimumf %72, %29 : vector<8x128xf32>
    %81 = arith.minimumf %77, %34 : vector<8x128xf32>
    %82 = arith.subf %80, %78 : vector<8x128xf32>
    %cst_58 = arith.constant 0.000000e+00 : f32
    %83 = vector.broadcast %cst_58 : f32 to vector<8x128xf32>
    %84 = arith.maximumf %82, %83 : vector<8x128xf32>
    %85 = arith.subf %81, %79 : vector<8x128xf32>
    %cst_59 = arith.constant 0.000000e+00 : f32
    %86 = vector.broadcast %cst_59 : f32 to vector<8x128xf32>
    %87 = arith.maximumf %85, %86 : vector<8x128xf32>
    %88 = arith.mulf %84, %87 : vector<8x128xf32>
    %89 = arith.subf %72, %62 : vector<8x128xf32>
    %90 = arith.subf %77, %67 : vector<8x128xf32>
    %91 = arith.mulf %89, %90 : vector<8x128xf32>
    %92 = arith.addf %91, %37 : vector<8x128xf32>
    %93 = arith.subf %92, %88 : vector<8x128xf32>
    %cst_60 = arith.constant 0.000000e+00 : f32
    %94 = vector.broadcast %cst_60 : f32 to vector<8x128xf32>
    %95 = arith.cmpf oeq, %93, %94 : vector<8x128xf32>
    %cst_61 = arith.constant 1.000000e+00 : f32
    %96 = vector.broadcast %cst_61 : f32 to vector<8x128xf32>
    %97 = arith.select %95, %96, %93 : vector<8x128xi1>, vector<8x128xf32>
    %98 = arith.divf %88, %97 : vector<8x128xf32>
    %99 = arith.subf %47, %57 : vector<8x128xf32>
    %100 = arith.mulf %99, %99 : vector<8x128xf32>
    %101 = arith.addf %6, %100 : vector<8x128xf32>
    %102 = arith.subf %39, %49 : vector<8x128xf32>
    %103 = arith.mulf %102, %102 : vector<8x128xf32>
    %104 = arith.subf %41, %51 : vector<8x128xf32>
    %105 = arith.mulf %104, %104 : vector<8x128xf32>
    %106 = arith.addf %103, %105 : vector<8x128xf32>
    %107 = arith.addf %43, %53 : vector<8x128xf32>
    %108 = arith.mulf %43, %53 : vector<8x128xf32>
    %cst_62 = arith.constant 0.000000e+00 : f32
    %109 = vector.broadcast %cst_62 : f32 to vector<8x128xf32>
    %110 = arith.maximumf %108, %109 : vector<8x128xf32>
    %111 = math.sqrt %110 : vector<8x128xf32>
    %cst_63 = arith.constant 2.000000e+00 : f32
    %112 = vector.broadcast %cst_63 : f32 to vector<8x128xf32>
    %113 = arith.mulf %112, %111 : vector<8x128xf32>
    %114 = arith.subf %107, %113 : vector<8x128xf32>
    %115 = arith.addf %114, %45 : vector<8x128xf32>
    %116 = arith.addf %115, %55 : vector<8x128xf32>
    %117 = arith.mulf %45, %55 : vector<8x128xf32>
    %cst_64 = arith.constant 0.000000e+00 : f32
    %118 = vector.broadcast %cst_64 : f32 to vector<8x128xf32>
    %119 = arith.maximumf %117, %118 : vector<8x128xf32>
    %120 = math.sqrt %119 : vector<8x128xf32>
    %cst_65 = arith.constant 2.000000e+00 : f32
    %121 = vector.broadcast %cst_65 : f32 to vector<8x128xf32>
    %122 = arith.mulf %121, %120 : vector<8x128xf32>
    %123 = arith.subf %116, %122 : vector<8x128xf32>
    %c5 = arith.constant 5 : index
    %c0_66 = arith.constant 0 : index
    %c0_67 = arith.constant 0 : index
    %124 = vector.load %arg1[%c5, %c0_66, %c0_67] : memref<30x8x128xf32, #tpu.memory_space<vmem>>, vector<1x8x128xf32>
    %125 = vector.shape_cast %124 : vector<1x8x128xf32> to vector<8x128xf32>
    %c6 = arith.constant 6 : index
    %c0_68 = arith.constant 0 : index
    %c0_69 = arith.constant 0 : index
    %126 = vector.load %arg1[%c6, %c0_68, %c0_69] : memref<30x8x128xf32, #tpu.memory_space<vmem>>, vector<1x8x128xf32>
    %127 = vector.shape_cast %126 : vector<1x8x128xf32> to vector<8x128xf32>
    %c7 = arith.constant 7 : index
    %c0_70 = arith.constant 0 : index
    %c0_71 = arith.constant 0 : index
    %128 = vector.load %arg1[%c7, %c0_70, %c0_71] : memref<30x8x128xf32, #tpu.memory_space<vmem>>, vector<1x8x128xf32>
    %129 = vector.shape_cast %128 : vector<1x8x128xf32> to vector<8x128xf32>
    %c8 = arith.constant 8 : index
    %c0_72 = arith.constant 0 : index
    %c0_73 = arith.constant 0 : index
    %130 = vector.load %arg1[%c8, %c0_72, %c0_73] : memref<30x8x128xf32, #tpu.memory_space<vmem>>, vector<1x8x128xf32>
    %131 = vector.shape_cast %130 : vector<1x8x128xf32> to vector<8x128xf32>
    %c9 = arith.constant 9 : index
    %c0_74 = arith.constant 0 : index
    %c0_75 = arith.constant 0 : index
    %132 = vector.load %arg1[%c9, %c0_74, %c0_75] : memref<30x8x128xf32, #tpu.memory_space<vmem>>, vector<1x8x128xf32>
    %133 = vector.shape_cast %132 : vector<1x8x128xf32> to vector<8x128xf32>
    %c5_76 = arith.constant 5 : index
    %c0_77 = arith.constant 0 : index
    %c0_78 = arith.constant 0 : index
    %134 = vector.load %arg2[%c5_76, %c0_77, %c0_78] : memref<30x8x128xf32, #tpu.memory_space<vmem>>, vector<1x8x128xf32>
    %135 = vector.shape_cast %134 : vector<1x8x128xf32> to vector<8x128xf32>
    %c6_79 = arith.constant 6 : index
    %c0_80 = arith.constant 0 : index
    %c0_81 = arith.constant 0 : index
    %136 = vector.load %arg2[%c6_79, %c0_80, %c0_81] : memref<30x8x128xf32, #tpu.memory_space<vmem>>, vector<1x8x128xf32>
    %137 = vector.shape_cast %136 : vector<1x8x128xf32> to vector<8x128xf32>
    %c7_82 = arith.constant 7 : index
    %c0_83 = arith.constant 0 : index
    %c0_84 = arith.constant 0 : index
    %138 = vector.load %arg2[%c7_82, %c0_83, %c0_84] : memref<30x8x128xf32, #tpu.memory_space<vmem>>, vector<1x8x128xf32>
    %139 = vector.shape_cast %138 : vector<1x8x128xf32> to vector<8x128xf32>
    %c8_85 = arith.constant 8 : index
    %c0_86 = arith.constant 0 : index
    %c0_87 = arith.constant 0 : index
    %140 = vector.load %arg2[%c8_85, %c0_86, %c0_87] : memref<30x8x128xf32, #tpu.memory_space<vmem>>, vector<1x8x128xf32>
    %141 = vector.shape_cast %140 : vector<1x8x128xf32> to vector<8x128xf32>
    %c9_88 = arith.constant 9 : index
    %c0_89 = arith.constant 0 : index
    %c0_90 = arith.constant 0 : index
    %142 = vector.load %arg2[%c9_88, %c0_89, %c0_90] : memref<30x8x128xf32, #tpu.memory_space<vmem>>, vector<1x8x128xf32>
    %143 = vector.shape_cast %142 : vector<1x8x128xf32> to vector<8x128xf32>
    %cst_91 = arith.constant 1.250000e-01 : f32
    %144 = vector.broadcast %cst_91 : f32 to vector<8x128xf32>
    %145 = arith.mulf %125, %144 : vector<8x128xf32>
    %cst_92 = arith.constant 5.000000e-01 : f32
    %146 = vector.broadcast %cst_92 : f32 to vector<8x128xf32>
    %147 = arith.mulf %146, %129 : vector<8x128xf32>
    %148 = arith.subf %145, %147 : vector<8x128xf32>
    %cst_93 = arith.constant 1.250000e-01 : f32
    %149 = vector.broadcast %cst_93 : f32 to vector<8x128xf32>
    %150 = arith.mulf %127, %149 : vector<8x128xf32>
    %cst_94 = arith.constant 5.000000e-01 : f32
    %151 = vector.broadcast %cst_94 : f32 to vector<8x128xf32>
    %152 = arith.mulf %151, %131 : vector<8x128xf32>
    %153 = arith.subf %150, %152 : vector<8x128xf32>
    %cst_95 = arith.constant 1.250000e-01 : f32
    %154 = vector.broadcast %cst_95 : f32 to vector<8x128xf32>
    %155 = arith.mulf %125, %154 : vector<8x128xf32>
    %cst_96 = arith.constant 5.000000e-01 : f32
    %156 = vector.broadcast %cst_96 : f32 to vector<8x128xf32>
    %157 = arith.mulf %156, %129 : vector<8x128xf32>
    %158 = arith.addf %155, %157 : vector<8x128xf32>
    %cst_97 = arith.constant 1.250000e-01 : f32
    %159 = vector.broadcast %cst_97 : f32 to vector<8x128xf32>
    %160 = arith.mulf %127, %159 : vector<8x128xf32>
    %cst_98 = arith.constant 5.000000e-01 : f32
    %161 = vector.broadcast %cst_98 : f32 to vector<8x128xf32>
    %162 = arith.mulf %161, %131 : vector<8x128xf32>
    %163 = arith.addf %160, %162 : vector<8x128xf32>
    %164 = arith.maximumf %148, %19 : vector<8x128xf32>
    %165 = arith.maximumf %153, %24 : vector<8x128xf32>
    %166 = arith.minimumf %158, %29 : vector<8x128xf32>
    %167 = arith.minimumf %163, %34 : vector<8x128xf32>
    %168 = arith.subf %166, %164 : vector<8x128xf32>
    %cst_99 = arith.constant 0.000000e+00 : f32
    %169 = vector.broadcast %cst_99 : f32 to vector<8x128xf32>
    %170 = arith.maximumf %168, %169 : vector<8x128xf32>
    %171 = arith.subf %167, %165 : vector<8x128xf32>
    %cst_100 = arith.constant 0.000000e+00 : f32
    %172 = vector.broadcast %cst_100 : f32 to vector<8x128xf32>
    %173 = arith.maximumf %171, %172 : vector<8x128xf32>
    %174 = arith.mulf %170, %173 : vector<8x128xf32>
    %175 = arith.subf %158, %148 : vector<8x128xf32>
    %176 = arith.subf %163, %153 : vector<8x128xf32>
    %177 = arith.mulf %175, %176 : vector<8x128xf32>
    %178 = arith.addf %177, %37 : vector<8x128xf32>
    %179 = arith.subf %178, %174 : vector<8x128xf32>
    %cst_101 = arith.constant 0.000000e+00 : f32
    %180 = vector.broadcast %cst_101 : f32 to vector<8x128xf32>
    %181 = arith.cmpf oeq, %179, %180 : vector<8x128xf32>
    %cst_102 = arith.constant 1.000000e+00 : f32
    %182 = vector.broadcast %cst_102 : f32 to vector<8x128xf32>
    %183 = arith.select %181, %182, %179 : vector<8x128xi1>, vector<8x128xf32>
    %184 = arith.divf %174, %183 : vector<8x128xf32>
    %185 = arith.subf %133, %143 : vector<8x128xf32>
    %186 = arith.mulf %185, %185 : vector<8x128xf32>
    %187 = arith.addf %101, %186 : vector<8x128xf32>
    %188 = arith.subf %125, %135 : vector<8x128xf32>
    %189 = arith.mulf %188, %188 : vector<8x128xf32>
    %190 = arith.subf %127, %137 : vector<8x128xf32>
    %191 = arith.mulf %190, %190 : vector<8x128xf32>
    %192 = arith.addf %189, %191 : vector<8x128xf32>
    %193 = arith.addf %129, %139 : vector<8x128xf32>
    %194 = arith.mulf %129, %139 : vector<8x128xf32>
    %cst_103 = arith.constant 0.000000e+00 : f32
    %195 = vector.broadcast %cst_103 : f32 to vector<8x128xf32>
    %196 = arith.maximumf %194, %195 : vector<8x128xf32>
    %197 = math.sqrt %196 : vector<8x128xf32>
    %cst_104 = arith.constant 2.000000e+00 : f32
    %198 = vector.broadcast %cst_104 : f32 to vector<8x128xf32>
    %199 = arith.mulf %198, %197 : vector<8x128xf32>
    %200 = arith.subf %193, %199 : vector<8x128xf32>
    %201 = arith.addf %200, %131 : vector<8x128xf32>
    %202 = arith.addf %201, %141 : vector<8x128xf32>
    %203 = arith.mulf %131, %141 : vector<8x128xf32>
    %cst_105 = arith.constant 0.000000e+00 : f32
    %204 = vector.broadcast %cst_105 : f32 to vector<8x128xf32>
    %205 = arith.maximumf %203, %204 : vector<8x128xf32>
    %206 = math.sqrt %205 : vector<8x128xf32>
    %cst_106 = arith.constant 2.000000e+00 : f32
    %207 = vector.broadcast %cst_106 : f32 to vector<8x128xf32>
    %208 = arith.mulf %207, %206 : vector<8x128xf32>
    %209 = arith.subf %202, %208 : vector<8x128xf32>
    %true = arith.constant true
    %210 = vector.broadcast %true : i1 to vector<8x128xi1>
    %211 = arith.cmpf ogt, %184, %98 : vector<8x128xf32>
    %cst_107 = arith.constant dense<true> : vector<8x128xi1>
    %212 = arith.xori %211, %cst_107 : vector<8x128xi1>
    %213 = arith.andi %210, %212 : vector<8x128xi1>
    %214 = arith.select %211, %184, %98 : vector<8x128xi1>, vector<8x128xf32>
    %215 = arith.select %213, %106, %6 : vector<8x128xi1>, vector<8x128xf32>
    %216 = arith.addf %6, %215 : vector<8x128xf32>
    %217 = arith.select %213, %123, %6 : vector<8x128xi1>, vector<8x128xf32>
    %218 = arith.addf %6, %217 : vector<8x128xf32>
    %219 = arith.subf %47, %214 : vector<8x128xf32>
    %220 = arith.mulf %219, %219 : vector<8x128xf32>
    %221 = arith.select %213, %220, %6 : vector<8x128xi1>, vector<8x128xf32>
    %222 = arith.addf %6, %221 : vector<8x128xf32>
    %223 = arith.mulf %47, %47 : vector<8x128xf32>
    %224 = arith.select %213, %6, %223 : vector<8x128xi1>, vector<8x128xf32>
    %225 = arith.addf %6, %224 : vector<8x128xf32>
    %226 = arith.select %211, %192, %6 : vector<8x128xi1>, vector<8x128xf32>
    %227 = arith.addf %216, %226 : vector<8x128xf32>
    %228 = arith.select %211, %209, %6 : vector<8x128xi1>, vector<8x128xf32>
    %229 = arith.addf %218, %228 : vector<8x128xf32>
    %230 = arith.subf %133, %214 : vector<8x128xf32>
    %231 = arith.mulf %230, %230 : vector<8x128xf32>
    %232 = arith.select %211, %231, %6 : vector<8x128xi1>, vector<8x128xf32>
    %233 = arith.addf %222, %232 : vector<8x128xf32>
    %234 = arith.mulf %133, %133 : vector<8x128xf32>
    %235 = arith.select %211, %6, %234 : vector<8x128xi1>, vector<8x128xf32>
    %236 = arith.addf %225, %235 : vector<8x128xf32>
    %c10 = arith.constant 10 : index
    %c0_108 = arith.constant 0 : index
    %c0_109 = arith.constant 0 : index
    %237 = vector.load %arg1[%c10, %c0_108, %c0_109] : memref<30x8x128xf32, #tpu.memory_space<vmem>>, vector<1x8x128xf32>
    %238 = vector.shape_cast %237 : vector<1x8x128xf32> to vector<8x128xf32>
    %c10_110 = arith.constant 10 : index
    %c0_111 = arith.constant 0 : index
    %c0_112 = arith.constant 0 : index
    %239 = vector.load %arg2[%c10_110, %c0_111, %c0_112] : memref<30x8x128xf32, #tpu.memory_space<vmem>>, vector<1x8x128xf32>
    %240 = vector.shape_cast %239 : vector<1x8x128xf32> to vector<8x128xf32>
    %241 = arith.subf %238, %240 : vector<8x128xf32>
    %242 = arith.mulf %241, %241 : vector<8x128xf32>
    %243 = arith.addf %6, %242 : vector<8x128xf32>
    %c11 = arith.constant 11 : index
    %c0_113 = arith.constant 0 : index
    %c0_114 = arith.constant 0 : index
    %244 = vector.load %arg1[%c11, %c0_113, %c0_114] : memref<30x8x128xf32, #tpu.memory_space<vmem>>, vector<1x8x128xf32>
    %245 = vector.shape_cast %244 : vector<1x8x128xf32> to vector<8x128xf32>
    %c11_115 = arith.constant 11 : index
    %c0_116 = arith.constant 0 : index
    %c0_117 = arith.constant 0 : index
    %246 = vector.load %arg2[%c11_115, %c0_116, %c0_117] : memref<30x8x128xf32, #tpu.memory_space<vmem>>, vector<1x8x128xf32>
    %247 = vector.shape_cast %246 : vector<1x8x128xf32> to vector<8x128xf32>
    %248 = arith.subf %245, %247 : vector<8x128xf32>
    %249 = arith.mulf %248, %248 : vector<8x128xf32>
    %250 = arith.addf %243, %249 : vector<8x128xf32>
    %c12 = arith.constant 12 : index
    %c0_118 = arith.constant 0 : index
    %c0_119 = arith.constant 0 : index
    %251 = vector.load %arg1[%c12, %c0_118, %c0_119] : memref<30x8x128xf32, #tpu.memory_space<vmem>>, vector<1x8x128xf32>
    %252 = vector.shape_cast %251 : vector<1x8x128xf32> to vector<8x128xf32>
    %c12_120 = arith.constant 12 : index
    %c0_121 = arith.constant 0 : index
    %c0_122 = arith.constant 0 : index
    %253 = vector.load %arg2[%c12_120, %c0_121, %c0_122] : memref<30x8x128xf32, #tpu.memory_space<vmem>>, vector<1x8x128xf32>
    %254 = vector.shape_cast %253 : vector<1x8x128xf32> to vector<8x128xf32>
    %255 = arith.subf %252, %254 : vector<8x128xf32>
    %256 = arith.mulf %255, %255 : vector<8x128xf32>
    %257 = arith.addf %250, %256 : vector<8x128xf32>
    %c13 = arith.constant 13 : index
    %c0_123 = arith.constant 0 : index
    %c0_124 = arith.constant 0 : index
    %258 = vector.load %arg1[%c13, %c0_123, %c0_124] : memref<30x8x128xf32, #tpu.memory_space<vmem>>, vector<1x8x128xf32>
    %259 = vector.shape_cast %258 : vector<1x8x128xf32> to vector<8x128xf32>
    %c13_125 = arith.constant 13 : index
    %c0_126 = arith.constant 0 : index
    %c0_127 = arith.constant 0 : index
    %260 = vector.load %arg2[%c13_125, %c0_126, %c0_127] : memref<30x8x128xf32, #tpu.memory_space<vmem>>, vector<1x8x128xf32>
    %261 = vector.shape_cast %260 : vector<1x8x128xf32> to vector<8x128xf32>
    %262 = arith.subf %259, %261 : vector<8x128xf32>
    %263 = arith.mulf %262, %262 : vector<8x128xf32>
    %264 = arith.addf %257, %263 : vector<8x128xf32>
    %c14 = arith.constant 14 : index
    %c0_128 = arith.constant 0 : index
    %c0_129 = arith.constant 0 : index
    %265 = vector.load %arg1[%c14, %c0_128, %c0_129] : memref<30x8x128xf32, #tpu.memory_space<vmem>>, vector<1x8x128xf32>
    %266 = vector.shape_cast %265 : vector<1x8x128xf32> to vector<8x128xf32>
    %c14_130 = arith.constant 14 : index
    %c0_131 = arith.constant 0 : index
    %c0_132 = arith.constant 0 : index
    %267 = vector.load %arg2[%c14_130, %c0_131, %c0_132] : memref<30x8x128xf32, #tpu.memory_space<vmem>>, vector<1x8x128xf32>
    %268 = vector.shape_cast %267 : vector<1x8x128xf32> to vector<8x128xf32>
    %269 = arith.subf %266, %268 : vector<8x128xf32>
    %270 = arith.mulf %269, %269 : vector<8x128xf32>
    %271 = arith.addf %264, %270 : vector<8x128xf32>
    %c15 = arith.constant 15 : index
    %c0_133 = arith.constant 0 : index
    %c0_134 = arith.constant 0 : index
    %272 = vector.load %arg1[%c15, %c0_133, %c0_134] : memref<30x8x128xf32, #tpu.memory_space<vmem>>, vector<1x8x128xf32>
    %273 = vector.shape_cast %272 : vector<1x8x128xf32> to vector<8x128xf32>
    %c15_135 = arith.constant 15 : index
    %c0_136 = arith.constant 0 : index
    %c0_137 = arith.constant 0 : index
    %274 = vector.load %arg2[%c15_135, %c0_136, %c0_137] : memref<30x8x128xf32, #tpu.memory_space<vmem>>, vector<1x8x128xf32>
    %275 = vector.shape_cast %274 : vector<1x8x128xf32> to vector<8x128xf32>
    %276 = arith.subf %273, %275 : vector<8x128xf32>
    %277 = arith.mulf %276, %276 : vector<8x128xf32>
    %278 = arith.addf %271, %277 : vector<8x128xf32>
    %c16 = arith.constant 16 : index
    %c0_138 = arith.constant 0 : index
    %c0_139 = arith.constant 0 : index
    %279 = vector.load %arg1[%c16, %c0_138, %c0_139] : memref<30x8x128xf32, #tpu.memory_space<vmem>>, vector<1x8x128xf32>
    %280 = vector.shape_cast %279 : vector<1x8x128xf32> to vector<8x128xf32>
    %c16_140 = arith.constant 16 : index
    %c0_141 = arith.constant 0 : index
    %c0_142 = arith.constant 0 : index
    %281 = vector.load %arg2[%c16_140, %c0_141, %c0_142] : memref<30x8x128xf32, #tpu.memory_space<vmem>>, vector<1x8x128xf32>
    %282 = vector.shape_cast %281 : vector<1x8x128xf32> to vector<8x128xf32>
    %283 = arith.subf %280, %282 : vector<8x128xf32>
    %284 = arith.mulf %283, %283 : vector<8x128xf32>
    %285 = arith.addf %278, %284 : vector<8x128xf32>
    %c17 = arith.constant 17 : index
    %c0_143 = arith.constant 0 : index
    %c0_144 = arith.constant 0 : index
    %286 = vector.load %arg1[%c17, %c0_143, %c0_144] : memref<30x8x128xf32, #tpu.memory_space<vmem>>, vector<1x8x128xf32>
    %287 = vector.shape_cast %286 : vector<1x8x128xf32> to vector<8x128xf32>
    %c17_145 = arith.constant 17 : index
    %c0_146 = arith.constant 0 : index
    %c0_147 = arith.constant 0 : index
    %288 = vector.load %arg2[%c17_145, %c0_146, %c0_147] : memref<30x8x128xf32, #tpu.memory_space<vmem>>, vector<1x8x128xf32>
    %289 = vector.shape_cast %288 : vector<1x8x128xf32> to vector<8x128xf32>
    %290 = arith.subf %287, %289 : vector<8x128xf32>
    %291 = arith.mulf %290, %290 : vector<8x128xf32>
    %292 = arith.addf %285, %291 : vector<8x128xf32>
    %c18 = arith.constant 18 : index
    %c0_148 = arith.constant 0 : index
    %c0_149 = arith.constant 0 : index
    %293 = vector.load %arg1[%c18, %c0_148, %c0_149] : memref<30x8x128xf32, #tpu.memory_space<vmem>>, vector<1x8x128xf32>
    %294 = vector.shape_cast %293 : vector<1x8x128xf32> to vector<8x128xf32>
    %c18_150 = arith.constant 18 : index
    %c0_151 = arith.constant 0 : index
    %c0_152 = arith.constant 0 : index
    %295 = vector.load %arg2[%c18_150, %c0_151, %c0_152] : memref<30x8x128xf32, #tpu.memory_space<vmem>>, vector<1x8x128xf32>
    %296 = vector.shape_cast %295 : vector<1x8x128xf32> to vector<8x128xf32>
    %297 = arith.subf %294, %296 : vector<8x128xf32>
    %298 = arith.mulf %297, %297 : vector<8x128xf32>
    %299 = arith.addf %292, %298 : vector<8x128xf32>
    %c19 = arith.constant 19 : index
    %c0_153 = arith.constant 0 : index
    %c0_154 = arith.constant 0 : index
    %300 = vector.load %arg1[%c19, %c0_153, %c0_154] : memref<30x8x128xf32, #tpu.memory_space<vmem>>, vector<1x8x128xf32>
    %301 = vector.shape_cast %300 : vector<1x8x128xf32> to vector<8x128xf32>
    %c19_155 = arith.constant 19 : index
    %c0_156 = arith.constant 0 : index
    %c0_157 = arith.constant 0 : index
    %302 = vector.load %arg2[%c19_155, %c0_156, %c0_157] : memref<30x8x128xf32, #tpu.memory_space<vmem>>, vector<1x8x128xf32>
    %303 = vector.shape_cast %302 : vector<1x8x128xf32> to vector<8x128xf32>
    %304 = arith.subf %301, %303 : vector<8x128xf32>
    %305 = arith.mulf %304, %304 : vector<8x128xf32>
    %306 = arith.addf %299, %305 : vector<8x128xf32>
    %c20 = arith.constant 20 : index
    %c0_158 = arith.constant 0 : index
    %c0_159 = arith.constant 0 : index
    %307 = vector.load %arg1[%c20, %c0_158, %c0_159] : memref<30x8x128xf32, #tpu.memory_space<vmem>>, vector<1x8x128xf32>
    %308 = vector.shape_cast %307 : vector<1x8x128xf32> to vector<8x128xf32>
    %c20_160 = arith.constant 20 : index
    %c0_161 = arith.constant 0 : index
    %c0_162 = arith.constant 0 : index
    %309 = vector.load %arg2[%c20_160, %c0_161, %c0_162] : memref<30x8x128xf32, #tpu.memory_space<vmem>>, vector<1x8x128xf32>
    %310 = vector.shape_cast %309 : vector<1x8x128xf32> to vector<8x128xf32>
    %311 = arith.subf %308, %310 : vector<8x128xf32>
    %312 = arith.mulf %311, %311 : vector<8x128xf32>
    %313 = arith.addf %306, %312 : vector<8x128xf32>
    %c21 = arith.constant 21 : index
    %c0_163 = arith.constant 0 : index
    %c0_164 = arith.constant 0 : index
    %314 = vector.load %arg1[%c21, %c0_163, %c0_164] : memref<30x8x128xf32, #tpu.memory_space<vmem>>, vector<1x8x128xf32>
    %315 = vector.shape_cast %314 : vector<1x8x128xf32> to vector<8x128xf32>
    %c21_165 = arith.constant 21 : index
    %c0_166 = arith.constant 0 : index
    %c0_167 = arith.constant 0 : index
    %316 = vector.load %arg2[%c21_165, %c0_166, %c0_167] : memref<30x8x128xf32, #tpu.memory_space<vmem>>, vector<1x8x128xf32>
    %317 = vector.shape_cast %316 : vector<1x8x128xf32> to vector<8x128xf32>
    %318 = arith.subf %315, %317 : vector<8x128xf32>
    %319 = arith.mulf %318, %318 : vector<8x128xf32>
    %320 = arith.addf %313, %319 : vector<8x128xf32>
    %c22 = arith.constant 22 : index
    %c0_168 = arith.constant 0 : index
    %c0_169 = arith.constant 0 : index
    %321 = vector.load %arg1[%c22, %c0_168, %c0_169] : memref<30x8x128xf32, #tpu.memory_space<vmem>>, vector<1x8x128xf32>
    %322 = vector.shape_cast %321 : vector<1x8x128xf32> to vector<8x128xf32>
    %c22_170 = arith.constant 22 : index
    %c0_171 = arith.constant 0 : index
    %c0_172 = arith.constant 0 : index
    %323 = vector.load %arg2[%c22_170, %c0_171, %c0_172] : memref<30x8x128xf32, #tpu.memory_space<vmem>>, vector<1x8x128xf32>
    %324 = vector.shape_cast %323 : vector<1x8x128xf32> to vector<8x128xf32>
    %325 = arith.subf %322, %324 : vector<8x128xf32>
    %326 = arith.mulf %325, %325 : vector<8x128xf32>
    %327 = arith.addf %320, %326 : vector<8x128xf32>
    %c23 = arith.constant 23 : index
    %c0_173 = arith.constant 0 : index
    %c0_174 = arith.constant 0 : index
    %328 = vector.load %arg1[%c23, %c0_173, %c0_174] : memref<30x8x128xf32, #tpu.memory_space<vmem>>, vector<1x8x128xf32>
    %329 = vector.shape_cast %328 : vector<1x8x128xf32> to vector<8x128xf32>
    %c23_175 = arith.constant 23 : index
    %c0_176 = arith.constant 0 : index
    %c0_177 = arith.constant 0 : index
    %330 = vector.load %arg2[%c23_175, %c0_176, %c0_177] : memref<30x8x128xf32, #tpu.memory_space<vmem>>, vector<1x8x128xf32>
    %331 = vector.shape_cast %330 : vector<1x8x128xf32> to vector<8x128xf32>
    %332 = arith.subf %329, %331 : vector<8x128xf32>
    %333 = arith.mulf %332, %332 : vector<8x128xf32>
    %334 = arith.addf %327, %333 : vector<8x128xf32>
    %c24 = arith.constant 24 : index
    %c0_178 = arith.constant 0 : index
    %c0_179 = arith.constant 0 : index
    %335 = vector.load %arg1[%c24, %c0_178, %c0_179] : memref<30x8x128xf32, #tpu.memory_space<vmem>>, vector<1x8x128xf32>
    %336 = vector.shape_cast %335 : vector<1x8x128xf32> to vector<8x128xf32>
    %c24_180 = arith.constant 24 : index
    %c0_181 = arith.constant 0 : index
    %c0_182 = arith.constant 0 : index
    %337 = vector.load %arg2[%c24_180, %c0_181, %c0_182] : memref<30x8x128xf32, #tpu.memory_space<vmem>>, vector<1x8x128xf32>
    %338 = vector.shape_cast %337 : vector<1x8x128xf32> to vector<8x128xf32>
    %339 = arith.subf %336, %338 : vector<8x128xf32>
    %340 = arith.mulf %339, %339 : vector<8x128xf32>
    %341 = arith.addf %334, %340 : vector<8x128xf32>
    %c25 = arith.constant 25 : index
    %c0_183 = arith.constant 0 : index
    %c0_184 = arith.constant 0 : index
    %342 = vector.load %arg1[%c25, %c0_183, %c0_184] : memref<30x8x128xf32, #tpu.memory_space<vmem>>, vector<1x8x128xf32>
    %343 = vector.shape_cast %342 : vector<1x8x128xf32> to vector<8x128xf32>
    %c25_185 = arith.constant 25 : index
    %c0_186 = arith.constant 0 : index
    %c0_187 = arith.constant 0 : index
    %344 = vector.load %arg2[%c25_185, %c0_186, %c0_187] : memref<30x8x128xf32, #tpu.memory_space<vmem>>, vector<1x8x128xf32>
    %345 = vector.shape_cast %344 : vector<1x8x128xf32> to vector<8x128xf32>
    %346 = arith.subf %343, %345 : vector<8x128xf32>
    %347 = arith.mulf %346, %346 : vector<8x128xf32>
    %348 = arith.addf %341, %347 : vector<8x128xf32>
    %c26 = arith.constant 26 : index
    %c0_188 = arith.constant 0 : index
    %c0_189 = arith.constant 0 : index
    %349 = vector.load %arg1[%c26, %c0_188, %c0_189] : memref<30x8x128xf32, #tpu.memory_space<vmem>>, vector<1x8x128xf32>
    %350 = vector.shape_cast %349 : vector<1x8x128xf32> to vector<8x128xf32>
    %c26_190 = arith.constant 26 : index
    %c0_191 = arith.constant 0 : index
    %c0_192 = arith.constant 0 : index
    %351 = vector.load %arg2[%c26_190, %c0_191, %c0_192] : memref<30x8x128xf32, #tpu.memory_space<vmem>>, vector<1x8x128xf32>
    %352 = vector.shape_cast %351 : vector<1x8x128xf32> to vector<8x128xf32>
    %353 = arith.subf %350, %352 : vector<8x128xf32>
    %354 = arith.mulf %353, %353 : vector<8x128xf32>
    %355 = arith.addf %348, %354 : vector<8x128xf32>
    %c27 = arith.constant 27 : index
    %c0_193 = arith.constant 0 : index
    %c0_194 = arith.constant 0 : index
    %356 = vector.load %arg1[%c27, %c0_193, %c0_194] : memref<30x8x128xf32, #tpu.memory_space<vmem>>, vector<1x8x128xf32>
    %357 = vector.shape_cast %356 : vector<1x8x128xf32> to vector<8x128xf32>
    %c27_195 = arith.constant 27 : index
    %c0_196 = arith.constant 0 : index
    %c0_197 = arith.constant 0 : index
    %358 = vector.load %arg2[%c27_195, %c0_196, %c0_197] : memref<30x8x128xf32, #tpu.memory_space<vmem>>, vector<1x8x128xf32>
    %359 = vector.shape_cast %358 : vector<1x8x128xf32> to vector<8x128xf32>
    %360 = arith.subf %357, %359 : vector<8x128xf32>
    %361 = arith.mulf %360, %360 : vector<8x128xf32>
    %362 = arith.addf %355, %361 : vector<8x128xf32>
    %c28 = arith.constant 28 : index
    %c0_198 = arith.constant 0 : index
    %c0_199 = arith.constant 0 : index
    %363 = vector.load %arg1[%c28, %c0_198, %c0_199] : memref<30x8x128xf32, #tpu.memory_space<vmem>>, vector<1x8x128xf32>
    %364 = vector.shape_cast %363 : vector<1x8x128xf32> to vector<8x128xf32>
    %c28_200 = arith.constant 28 : index
    %c0_201 = arith.constant 0 : index
    %c0_202 = arith.constant 0 : index
    %365 = vector.load %arg2[%c28_200, %c0_201, %c0_202] : memref<30x8x128xf32, #tpu.memory_space<vmem>>, vector<1x8x128xf32>
    %366 = vector.shape_cast %365 : vector<1x8x128xf32> to vector<8x128xf32>
    %367 = arith.subf %364, %366 : vector<8x128xf32>
    %368 = arith.mulf %367, %367 : vector<8x128xf32>
    %369 = arith.addf %362, %368 : vector<8x128xf32>
    %c29 = arith.constant 29 : index
    %c0_203 = arith.constant 0 : index
    %c0_204 = arith.constant 0 : index
    %370 = vector.load %arg1[%c29, %c0_203, %c0_204] : memref<30x8x128xf32, #tpu.memory_space<vmem>>, vector<1x8x128xf32>
    %371 = vector.shape_cast %370 : vector<1x8x128xf32> to vector<8x128xf32>
    %c29_205 = arith.constant 29 : index
    %c0_206 = arith.constant 0 : index
    %c0_207 = arith.constant 0 : index
    %372 = vector.load %arg2[%c29_205, %c0_206, %c0_207] : memref<30x8x128xf32, #tpu.memory_space<vmem>>, vector<1x8x128xf32>
    %373 = vector.shape_cast %372 : vector<1x8x128xf32> to vector<8x128xf32>
    %374 = arith.subf %371, %373 : vector<8x128xf32>
    %375 = arith.mulf %374, %374 : vector<8x128xf32>
    %376 = arith.addf %369, %375 : vector<8x128xf32>
    %377 = arith.addf %227, %229 : vector<8x128xf32>
    %cst_208 = arith.constant 5.000000e+00 : f32
    %378 = vector.broadcast %cst_208 : f32 to vector<8x128xf32>
    %379 = arith.mulf %378, %377 : vector<8x128xf32>
    %cst_209 = arith.constant 2.000000e+00 : f32
    %380 = vector.broadcast %cst_209 : f32 to vector<8x128xf32>
    %381 = arith.mulf %380, %233 : vector<8x128xf32>
    %382 = arith.addf %379, %381 : vector<8x128xf32>
    %383 = arith.addf %382, %236 : vector<8x128xf32>
    %384 = arith.addf %383, %376 : vector<8x128xf32>
    %385 = arith.select %3, %384, %6 : vector<8x128xi1>, vector<8x128xf32>
    %cst_210 = arith.constant 5.000000e-01 : f32
    %386 = vector.broadcast %cst_210 : f32 to vector<8x128xf32>
    %387 = arith.mulf %386, %187 : vector<8x128xf32>
    %388 = arith.select %5, %387, %6 : vector<8x128xi1>, vector<8x128xf32>
    %389 = arith.addf %385, %388 : vector<8x128xf32>
    %c0_211 = arith.constant 0 : index
    %c0_212 = arith.constant 0 : index
    %390 = vector.load %arg3[%c0_211, %c0_212] : memref<8x128xf32, #tpu.memory_space<vmem>>, vector<8x128xf32>
    tpu.vector_store %arg3[%c0_211, %c0_212], %389 {strides = array<i32>} : memref<8x128xf32, #tpu.memory_space<vmem>>, vector<8x128xf32>,
    return
  }
  func.func @transform_0(%arg0: i32) -> (i32, i32, i32) {
    %c0_i32 = arith.constant 0 : i32
    %c0_i32_0 = arith.constant 0 : i32
    %c0_i32_1 = arith.constant 0 : i32
    return %c0_i32, %arg0, %c0_i32_0 : i32, i32, i32
  }
  func.func @transform_1(%arg0: i32) -> (i32, i32, i32) {
    %c0_i32 = arith.constant 0 : i32
    %c0_i32_0 = arith.constant 0 : i32
    %c0_i32_1 = arith.constant 0 : i32
    return %c0_i32, %arg0, %c0_i32_0 : i32, i32, i32
  }
  func.func @transform_2(%arg0: i32) -> (i32, i32) {
    %c0_i32 = arith.constant 0 : i32
    %c0_i32_0 = arith.constant 0 : i32
    return %arg0, %c0_i32 : i32, i32
  }
}

</mosaic_0001>

<bundles_post_ra>
// kernel: yolo_loss_pallas.1
= control target key start
LH: loop header
LB: loop body
LE: loop exit
PB: predicated region body
PF: predicated region fallthrough
CT: control target
= control target key end

     0   :  { %vm431_vm11 = vmmov 1   ;;  %s779_s0 = inlined_call_operand.vmem [shape: f32[30,8,128], index: 0, kind: input, shape index: {}]   ;;  %s780_s1 = inlined_call_operand.vmem [shape: f32[30,8,128], index: 1, kind: input, shape index: {}]   ;;  %s781_s2 = inlined_call_operand.vmem [shape: f32[8,128], index: 2, kind: output, shape index: {}]  }
   0x1   :  { %v450_v0 = vld [vmem:[%s780_s1] sm:$0xff]  ;;  %v455_v1 = vld [vmem:[%s780_s1 + $0x8] sm:$0xff]  ;;  %v460_v2 = vld [vmem:[%s780_s1 + $0x10] sm:$0xff] }
   0x2   :  { %v465_v3 = vld [vmem:[%s780_s1 + $0x18] sm:$0xff]  ;;  %v22_v4 = vmul.f32 0.125, %v450_v0  ;;  %v25_v5 = vmul.f32 0.125, %v455_v1  ;;  %v23_v6 = vmul.f32 0.5, %v460_v2  ;;  %v474_v8 = vld [vmem:[%s779_s0] sm:$0xff]  ;;  %v479_v9 = vld [vmem:[%s779_s0 + $0x8] sm:$0xff] }
   0x3   :  { %v26_v7 = vmul.f32 0.5, %v465_v3  ;;  %v484_v10 = vld [vmem:[%s779_s0 + $0x10] sm:$0xff]  ;;  %v489_v11 = vld [vmem:[%s779_s0 + $0x18] sm:$0xff]  ;;  %v42_v12 = vmul.f32 0.125, %v474_v8  ;;  %v45_v14 = vmul.f32 0.125, %v479_v9  ;;  %v498_v34 = vld [vmem:[%s779_s0 + $0x28] sm:$0xff] }
   0x4   :  { %v43_v13 = vmul.f32 0.5, %v484_v10  ;;  %v24_v15 = vsub.f32 %v22_v4, %v23_v6  ;;  %v28_v17 = vadd.f32 %v23_v6, %v22_v4  ;;  %v46_v20 = vmul.f32 0.5, %v489_v11  ;;  %v503_v35 = vld [vmem:[%s779_s0 + $0x30] sm:$0xff]  ;;  %v508_v36 = vld [vmem:[%s779_s0 + $0x38] sm:$0xff]  ;;  %v517_v39 = vld [vmem:[%s779_s0 + $0x40] sm:$0xff] }
   0x5   :  { %v27_v16 = vsub.f32 %v25_v5, %v26_v7  ;;  %v29_v18 = vadd.f32 %v26_v7, %v25_v5  ;;  %v77_v37 = vmul.f32 %v484_v10, %v460_v2  ;;  %v90_v38 = vmul.f32 %v489_v11, %v465_v3  ;;  %v535_v61 = vld [vmem:[%s780_s1 + $0x38] sm:$0xff]  ;;  %v540_v62 = vld [vmem:[%s780_s1 + $0x40] sm:$0xff]  ;;  %v378_v6 = vld [vmem:[%s779_s0 + $0x50] sm:$0xff] }
   0x6   :  { %v44_v19 = vsub.f32 %v42_v12, %v43_v13  ;;  %v48_v21 = vadd.f32 %v43_v13, %v42_v12  ;;  %v30_v22 = vsub.f32 %v28_v17, %v24_v15  ;;  %v47_v24 = vsub.f32 %v45_v14, %v46_v20  ;;  %v379_v7 = vld [vmem:[%s780_s1 + $0x50] sm:$0xff] }
   0x7   :  { %v31_v23 = vsub.f32 %v29_v18, %v27_v16  ;;  %v49_v25 = vadd.f32 %v46_v20, %v45_v14  ;;  %v519_v43 = vmax.f32 %v77_v37, 0.0  ;;  %v121_v44 = vmul.f32 0.125, %v498_v34 }
   0x8   :  { %v50_v26 = vmax.f32 %v44_v19, %v24_v15  ;;  %v52_v27 = vmin.f32 %v48_v21, %v28_v17  ;;  %v59_v29 = vsub.f32 %v48_v21, %v44_v19  ;;  %v51_v30 = vmax.f32 %v47_v24, %v27_v16  ;;  %v383_v21 = vld [vmem:[%s780_s1 + $0x60] sm:$0xff] }
   0x9   :  { %v32_v28 = vmul.f32 %v31_v23, %v30_v22  ;;  %v53_v31 = vmin.f32 %v49_v25, %v29_v18  ;;  %v60_v33 = vsub.f32 %v49_v25, %v47_v24  ;;  %v122_v45 = vmul.f32 0.5, %v508_v36  ;;  %v384_v22 = vld [vmem:[%s779_s0 + $0x68] sm:$0xff] }
   0xa   :  { %v54_v32 = vsub.f32 %v52_v27, %v50_v26  ;;  %v124_v46 = vmul.f32 0.125, %v503_v35  ;;  %v524_v49 = vmax.f32 %v90_v38, 0.0  ;;  %v125_v50 = vmul.f32 0.5, %v517_v39  ;;  %v385_v23 = vld [vmem:[%s780_s1 + $0x68] sm:$0xff] }
   0xb   :  { %v56_v41 = vsub.f32 %v53_v31, %v51_v30  ;;  %v61_v42 = vmul.f32 %v60_v33, %v59_v29  ;;  %419 = vrsqrt.f32 %v519_v43  ;;  %v123_v52 = vsub.f32 %v121_v44, %v122_v45 }
   0xc   :  { %v55_v40 = vmax.f32 %v54_v32, 0.0  ;;  %v126_v53 = vsub.f32 %v124_v46, %v125_v50  ;;  %v127_v54 = vadd.f32 %v122_v45, %v121_v44  ;;  %421 = vrsqrt.f32 %v524_v49 }
   0xd   :  { %v57_v47 = vmax.f32 %v56_v41, 0.0  ;;  %v62_v48 = vadd.f32 %v61_v42, %v32_v28  ;;  %v128_v56 = vadd.f32 %v125_v50, %v124_v46  ;;  %v129_v57 = vmax.f32 %v123_v52, %v24_v15  ;;  %v380_v15 = vld [vmem:[%s779_s0 + $0x58] sm:$0xff]  ;;  %v387_v41 = vld [vmem:[%s780_s1 + $0x70] sm:$0xff] }
   0xe   :  { %v130_v58 = vmax.f32 %v126_v53, %v27_v16  ;;  %v131_v59 = vmin.f32 %v127_v54, %v28_v17  ;;  %v138_v60 = vsub.f32 %v127_v54, %v123_v52  ;;  %v381_v16 = vld [vmem:[%s780_s1 + $0x58] sm:$0xff]  ;;  %v382_v17 = vld [vmem:[%s779_s0 + $0x60] sm:$0xff]  ;;  %v156_v19 = vmul.f32 %v535_v61, %v508_v36 }
   0xf   :  { %v528_v51 = vmul.f32 %v57_v47, %v55_v40  ;;  %v132_v63 = vmin.f32 %v128_v56, %v29_v18  ;;  %v139_v4 = vsub.f32 %v128_v56, %v126_v53  ;;  %v169_v20 = vmul.f32 %v540_v62, %v517_v39  ;;  %v386_v40 = vld [vmem:[%s779_s0 + $0x70] sm:$0xff]  ;;  %v388_v46 = vld [vmem:[%s779_s0 + $0x78] sm:$0xff] }
  0x10   :  { %v133_v5 = vsub.f32 %v131_v59, %v129_v57  ;;  %v570_v26 = vmax.f32 %v156_v19, 0.0  ;;  %v209_v29 = vsub.f32 %v378_v6, %v379_v7  ;;  %v216_v31 = vsub.f32 %v380_v15, %v381_v16  ;;  %v389_v47 = vld [vmem:[%s780_s1 + $0x78] sm:$0xff]  ;;  %v390_v59 = vld [vmem:[%s779_s0 + $0x80] sm:$0xff] }
  0x11   :  { %v63_v55 = vsub.f32 %v62_v48, %v528_v51  ;;  %v135_v13 = vsub.f32 %v132_v63, %v130_v58  ;;  %v140_v14 = vmul.f32 %v139_v4, %v138_v60  ;;  %v572_v27 = vmax.f32 %v169_v20, 0.0  ;;  %v392_v4 = vld [vmem:[%s779_s0 + $0x88] sm:$0xff] }
  0x12   :  { %v134_v18 = vmax.f32 %v133_v5, 0.0  ;;  %v223_v32 = vsub.f32 %v382_v17, %v383_v21  ;;  %v230_v33 = vsub.f32 %v384_v22, %v385_v23  ;;  %vm81_vm1 = vcmp.eq.f32.partialorder %v519_v43, inf  ;;  %v393_v5 = vld [vmem:[%s780_s1 + $0x88] sm:$0xff]  ;;  %v396_v23 = vld [vmem:[%s779_s0 + $0x98] sm:$0xff] }
  0x13   :  { %vm64_vm0 = vcmp.eq.f32.partialorder %v63_v55, 0.0  ;;  %v136_v24 = vmax.f32 %v135_v13, 0.0  ;;  %v141_v25 = vadd.f32 %v140_v14, %v32_v28  ;;  %v84_v38 = vand.u32 2147483648, %v519_v43  ;;  %v395_v14 = vld [vmem:[%s780_s1 + $0x90] sm:$0xff] }
  0x14   :  { %v65_v12 = vsel %vm64_vm0, 1.0, %v63_v55  ;;  %vm83_vm2 = vcmp.eq.f32.partialorder %v519_v43, 0.0  ;;  %v210_v44 = vmul.f32 %v209_v29, %v209_v29  ;;  %v217_v45 = vmul.f32 %v216_v31, %v216_v31  ;;  %v373_v55 = vld [vmem:[%s780_s1 + $0x28] sm:$0xff] }
  0x15   :  { %423 = vrcp.f32 %v65_v12  ;;  %v574_v30 = vmul.f32 %v136_v24, %v134_v18  ;;  %v71_v48 = vsub.f32 %v474_v8, %v450_v0  ;;  %v224_v50 = vmul.f32 %v223_v32, %v223_v32  ;;  %v391_v0 = vld [vmem:[%s780_s1 + $0x80] sm:$0xff]  ;;  %v397_v24 = vld [vmem:[%s780_s1 + $0x98] sm:$0xff] }
  0x16   :  { %425 = vrsqrt.f32 %v570_v26  ;;  %v231_v52 = vmul.f32 %v230_v33, %v230_v33  ;;  %v218_v57 = vadd.f32 %v217_v45, %v210_v44  ;;  %v237_v58 = vsub.f32 %v386_v40, %v387_v41 }
  0x17   :  { %v142_v28 = vsub.f32 %v141_v25, %v574_v30  ;;  %427 = vrsqrt.f32 %v572_v27  ;;  %v73_v8 = vsub.f32 %v479_v9, %v455_v1  ;;  %v244_v63 = vsub.f32 %v388_v46, %v389_v47  ;;  %v398_v46 = vld [vmem:[%s779_s0 + $0xa0] sm:$0xff] }
  0x18   :  { %v420_v37 = vpop.eup %419  ;;  %v76_v6 = vadd.f32 %v484_v10, %v460_v2  ;;  %v225_v12 = vadd.f32 %v224_v50, %v218_v57  ;;  %v238_v13 = vmul.f32 %v237_v58, %v237_v58  ;;  %v150_v1 = vsub.f32 %v498_v34, %v373_v55  ;;  %v374_v2 = vld [vmem:[%s780_s1 + $0x30] sm:$0xff]  ;;  %v399_v47 = vld [vmem:[%s780_s1 + $0xa0] sm:$0xff] }
  0x19   :  { %v80_v42 = vmul.f32 %v420_v37, %v519_v43  ;;  %vm143_vm3 = vcmp.eq.f32.partialorder %v142_v28, 0.0  ;;  %v422_v53 = vpop.eup %421  ;;  %v251_v9 = vsub.f32 %v390_v59, %v391_v0  ;;  %v245_v16 = vmul.f32 %v244_v63, %v244_v63 }
  0x1a   :  { %v144_v56 = vsel %vm143_vm3, 1.0, %v142_v28  ;;  %v93_v15 = vmul.f32 %v422_v53, %v524_v49  ;;  %v232_v10 = vadd.f32 %v231_v52, %v225_v12  ;;  %v258_v17 = vsub.f32 %v392_v4, %v393_v5  ;;  %v402_v5 = vld [vmem:[%s779_s0 + $0xb0] sm:$0xff] }
  0x1b   :  { %v82_v54 = vsel %vm81_vm1, %v519_v43, %v80_v42  ;;  %429 = vrcp.f32 %v144_v56  ;;  %v394_v43 = vld [vmem:[%s779_s0 + $0x90] sm:$0xff]  ;;  %v72_v18 = vmul.f32 %v71_v48, %v71_v48  ;;  %v74_v34 = vmul.f32 %v73_v8, %v73_v8  ;;  %v400_v56 = vld [vmem:[%s779_s0 + $0xa8] sm:$0xff] }
  0x1c   :  { %v85_v60 = vsel %vm83_vm2, %v84_v38, %v82_v54  ;;  %vm94_vm4 = vcmp.eq.f32.partialorder %v524_v49, inf  ;;  %vm96_vm5 = vcmp.eq.f32.partialorder %v524_v49, 0.0  ;;  %v239_v20 = vadd.f32 %v238_v13, %v232_v10  ;;  %v367_v13 = vld [vmem:[%s779_s0 + $0x20] sm:$0xff] }
  0x1d   :  { %v86_v7 = vmul.f32 2.0, %v85_v60  ;;  %v252_v21 = vmul.f32 %v251_v9, %v251_v9  ;;  %v265_v22 = vsub.f32 %v394_v43, %v395_v14  ;;  %v97_v29 = vand.u32 2147483648, %v524_v49  ;;  %v404_v14 = vld [vmem:[%s779_s0 + $0xb8] sm:$0xff] }
  0x1e   :  { %v151_v31 = vmul.f32 %v150_v1, %v150_v1  ;;  %v152_v32 = vsub.f32 %v503_v35, %v374_v2  ;;  %v155_v33 = vadd.f32 %v535_v61, %v508_v36  ;;  %v95_v37 = vsel %vm94_vm4, %v524_v49, %v93_v15  ;;  %v401_v49 = vld [vmem:[%s780_s1 + $0xa8] sm:$0xff]  ;;  %v405_v15 = vld [vmem:[%s780_s1 + $0xb8] sm:$0xff] }
  0x1f   :  { %v87_v19 = vsub.f32 %v76_v6, %v86_v7  ;;  %vm160_vm6 = vcmp.eq.f32.partialorder %v570_v26, inf  ;;  %v246_v38 = vadd.f32 %v245_v16, %v239_v20  ;;  %v259_v28 = vmul.f32 %v258_v17, %v258_v17  ;;  %v687_v6 = vld [vmem:[%s780_s1 + $0x20] sm:$0xff] }
  0x20   :  { %vm162_vm7 = vcmp.eq.f32.partialorder %v570_v26, 0.0  ;;  %v163_v41 = vand.u32 2147483648, %v570_v26  ;;  %vm173_vm8 = vcmp.eq.f32.partialorder %v572_v27, inf  ;;  %v272_v42 = vsub.f32 %v396_v23, %v397_v24 }
  0x21   :  { %v88_v35 = vadd.f32 %v489_v11, %v87_v19  ;;  %v253_v36 = vadd.f32 %v252_v21, %v246_v38  ;;  %v266_v61 = vmul.f32 %v265_v22, %v265_v22  ;;  %v98_v48 = vsel %vm96_vm5, %v97_v29, %v95_v37  ;;  %v406_v21 = vld [vmem:[%s779_s0 + $0xc0] sm:$0xff]  ;;  %v408_v29 = vld [vmem:[%s779_s0 + $0xc8] sm:$0xff] }
  0x22   :  { %v424_v25 = vpop.eup %423  ;;  %v153_v50 = vmul.f32 %v152_v32, %v152_v32  ;;  %v176_v11 = vand.u32 2147483648, %v572_v27  ;;  %vm175_vm9 = vcmp.eq.f32.partialorder %v572_v27, 0.0  ;;  %v273_v58 = vmul.f32 %v272_v42, %v272_v42  ;;  %v407_v22 = vld [vmem:[%s780_s1 + $0xc0] sm:$0xff] }
  0x23   :  { %v426_v40 = vpop.eup %425  ;;  %v67_v53 = vmul.f32 %v424_v25, %v528_v51  ;;  %v260_v55 = vadd.f32 %v259_v28, %v253_v36  ;;  %v279_v59 = vsub.f32 %v398_v46, %v399_v47  ;;  %v89_v8 = vadd.f32 %v465_v3, %v88_v35  ;;  %v377_v28 = vld [vmem:[%s780_s1 + $0x48] sm:$0xff]  ;;  %v410_v35 = vld [vmem:[%s779_s0 + $0xd0] sm:$0xff] }
  0x24   :  { %v428_v44 = vpop.eup %427  ;;  %v159_v45 = vmul.f32 %v426_v40, %v570_v26  ;;  %v99_v60 = vmul.f32 2.0, %v98_v48  ;;  %v286_v12 = vsub.f32 %v400_v56, %v401_v49  ;;  %v75_v1 = vadd.f32 %v74_v34, %v72_v18  ;;  %v412_v56 = vld [vmem:[%s779_s0 + $0xd8] sm:$0xff] }
  0x25   :  { %v172_v52 = vmul.f32 %v428_v44, %v572_v27  ;;  %v267_v4 = vadd.f32 %v266_v61, %v260_v55  ;;  %v154_v9 = vadd.f32 %v153_v50, %v151_v31  ;;  %v280_v10 = vmul.f32 %v279_v59, %v279_v59  ;;  %v409_v31 = vld [vmem:[%s780_s1 + $0xc8] sm:$0xff]  ;;  %v413_v49 = vld [vmem:[%s780_s1 + $0xd8] sm:$0xff] }
  0x26   :  { %v161_v54 = vsel %vm160_vm6, %v570_v26, %v159_v45  ;;  %v403_v26 = vld [vmem:[%s780_s1 + $0xb0] sm:$0xff]  ;;  %v100_v17 = vsub.f32 %v89_v8, %v99_v60  ;;  %v287_v24 = vmul.f32 %v286_v12, %v286_v12  ;;  %v300_v25 = vsub.f32 %v404_v14, %v405_v15  ;;  %v414_v60 = vld [vmem:[%s779_s0 + $0xe0] sm:$0xff] }
  0x27   :  { %v164_v57 = vsel %vm162_vm7, %v163_v41, %v161_v54  ;;  %v174_v51 = vsel %vm173_vm8, %v572_v27, %v172_v52  ;;  %v372_v27 = vld [vmem:[%s779_s0 + $0x48] sm:$0xff]  ;;  %v274_v2 = vadd.f32 %v273_v58, %v267_v4  ;;  %v293_v16 = vsub.f32 %v402_v5, %v403_v26 }
  0x28   :  { %v430_v0 = vpop.eup %429  ;;  %v165_v63 = vmul.f32 2.0, %v164_v57  ;;  %v177_v3 = vsel %vm175_vm9, %v176_v11, %v174_v51  ;;  %v307_v44 = vsub.f32 %v406_v21, %v407_v22  ;;  %v314_v46 = vsub.f32 %v408_v29, %v409_v31 }
  0x29   :  { %v146_v7 = vmul.f32 %v430_v0, %v574_v30  ;;  %v178_v34 = vmul.f32 2.0, %v177_v3  ;;  %v281_v41 = vadd.f32 %v280_v10, %v274_v2  ;;  %v294_v42 = vmul.f32 %v293_v16, %v293_v16 }
  0x2a   :  { %v166_v43 = vsub.f32 %v155_v33, %v165_v63  ;;  %v301_v52 = vmul.f32 %v300_v25, %v300_v25  ;;  %v147_v11 = vsub.f32 %v372_v27, %v377_v28  ;;  %v308_v59 = vmul.f32 %v307_v44, %v307_v44  ;;  %v415_v63 = vld [vmem:[%s780_s1 + $0xe0] sm:$0xff] }
  0x2b   :  { %vm704_vm10 = vcmp.gt.f32.partialorder %v146_v7, %v67_v53  ;;  %v288_v50 = vadd.f32 %v287_v24, %v281_v41  ;;  %v191_v0 = vmul.f32 %v367_v13, %v367_v13  ;;  %v202_v8 = vmul.f32 %v372_v27, %v372_v27 }
  0x2c   :  { %v167_v18 = vadd.f32 %v517_v39, %v166_v43  ;;  %vm711_vm12 = vmxor %vm704_vm10, %vm431_vm11  ;;  %v182_v20 = vsel %vm704_vm10, %v146_v7, %v67_v53  ;;  %v68_v39 = vsub.f32 %v367_v13, %v687_v6  ;;  %v194_v37 = vsel %vm704_vm10, %v154_v9, 0.0  ;;  %v417_v9 = vld [vmem:[%s780_s1 + $0xe8] sm:$0xff] }
  0x2d   :  { %v187_v23 = vsub.f32 %v367_v13, %v182_v20  ;;  %v183_v33 = vsel %vm711_vm12, %v75_v1, 0.0  ;;  %v198_v38 = vsub.f32 %v372_v27, %v182_v20  ;;  %v185_v36 = vsel %vm711_vm12, %v100_v17, 0.0  ;;  %v416_v13 = vld [vmem:[%s779_s0 + $0xe8] sm:$0xff] }
  0x2e   :  { %v168_v32 = vadd.f32 %v540_v62, %v167_v18  ;;  %v411_v62 = vld [vmem:[%s780_s1 + $0xd0] sm:$0xff]  ;;  %v195_v48 = vadd.f32 %v194_v37, %v183_v33  ;;  %v295_v58 = vadd.f32 %v294_v42, %v288_v50  ;;  %v315_v5 = vmul.f32 %v314_v46, %v314_v46 }
  0x2f   :  { %v188_v40 = vmul.f32 %v187_v23, %v187_v23  ;;  %v199_v61 = vmul.f32 %v198_v38, %v198_v38  ;;  %v321_v55 = vsub.f32 %v410_v35, %v411_v62  ;;  %v328_v26 = vsub.f32 %v412_v56, %v413_v49 }
  0x30   :  { %v179_v45 = vsub.f32 %v168_v32, %v178_v34  ;;  %v302_v4 = vadd.f32 %v301_v52, %v295_v58  ;;  %v69_v3 = vmul.f32 %v68_v39, %v68_v39  ;;  %v148_v12 = vmul.f32 %v147_v11, %v147_v11 }
  0x31   :  { %v189_v47 = vsel %vm711_vm12, %v188_v40, 0.0  ;;  %v200_v54 = vsel %vm704_vm10, %v199_v61, 0.0  ;;  %v322_v1 = vmul.f32 %v321_v55, %v321_v55  ;;  %v335_v14 = vsub.f32 %v414_v60, %v415_v63 }
  0x32   :  { %v196_v53 = vsel %vm704_vm10, %v179_v45, 0.0  ;;  %v201_v51 = vadd.f32 %v200_v54, %v189_v47  ;;  %v309_v43 = vadd.f32 %v308_v59, %v302_v4  ;;  %v192_v2 = vsel %vm711_vm12, 0.0, %v191_v0 }
  0x33   :  { %v197_v57 = vadd.f32 %v196_v53, %v185_v36  ;;  %v203_v10 = vsel %vm704_vm10, 0.0, %v202_v8  ;;  %v329_v17 = vmul.f32 %v328_v26, %v328_v26  ;;  %v342_v18 = vsub.f32 %v416_v13, %v417_v9 }
  0x34   :  { %v347_v27 = vmul.f32 2.0, %v201_v51  ;;  %v316_v16 = vadd.f32 %v315_v5, %v309_v43  ;;  %v149_v34 = vadd.f32 %v148_v12, %v69_v3  ;;  %v204_v20 = vadd.f32 %v203_v10, %v192_v2 }
  0x35   :  { %v345_v7 = vadd.f32 %v197_v57, %v195_v48  ;;  %v336_v22 = vmul.f32 %v335_v14, %v335_v14  ;;  %v343_v24 = vmul.f32 %v342_v18, %v342_v18  ;;  %vm14_vm13 = vcmp.eq.f32.partialorder %v687_v6, 0.0 }
  0x36   :  { %v323_v21 = vadd.f32 %v322_v1, %v316_v16  ;;  %v352_v31 = vmul.f32 0.5, %v149_v34  ;;  %vm13_vm14 = vcmp.gt.f32.partialorder %v687_v6, 0.0 }
  0x37   :  { %v346_v15 = vmul.f32 5.0, %v345_v7 }
  0x38   :  { %v330_v23 = vadd.f32 %v329_v17, %v323_v21  ;;  %v353_v32 = vsel %vm14_vm13, %v352_v31, 0.0 }
  0x39   :  { %v348_v39 = vadd.f32 %v347_v27, %v346_v15 }
  0x3a   :  { %v337_v25 = vadd.f32 %v336_v22, %v330_v23 }
  0x3b   :  { %v349_v29 = vadd.f32 %v348_v39, %v204_v20 }
  0x3c   :  { %v344_v19 = vadd.f32 %v343_v24, %v337_v25 }
  0x3e   :  { %v350_v30 = vadd.f32 %v349_v29, %v344_v19 }
  0x40   :  { %v351_v33 = vsel %vm13_vm14, %v350_v30, 0.0 }
  0x41   :  { %v354_v37 = vadd.f32 %v353_v32, %v351_v33 }
  0x43   :  { %355 = vst [vmem:[%s781_s2] sm:$0xff] %v354_v37 }

</bundles_post_ra>
